<compile_context>
chip_gen: v5e
topology: v5e:2x2
jax: 0.10.0
libtpu: 0.0.40
codegen_flags: <defaults>
</compile_context>

<pallas_src>
import functools
import math

import jax
import jax.numpy as jnp
from jax.experimental import pallas as pl
from jax.experimental.pallas import tpu as pltpu


# ---------------------------------------------------------------------------
# Fused kernel: one (batch, seq-tile) grid point per invocation.
# ---------------------------------------------------------------------------
def _fused_kernel(x_ref, vis_ref, wt_ref, wi_ref, wb_ref, o_ref, weff_ref, *,
                  c, add_relu, multiply_ones):
    r = wt_ref.shape[1]
    s_idx = pl.program_id(1)

    # ---- image branch + per-batch effective weight, computed once per batch ----
    @pl.when(s_idx == 0)
    def _():
        # ai = vis_feat[b] @ W_img_fused                (Sv, r), f32 MXU accumulation
        ai = jnp.dot(vis_ref[0], wi_ref[...], preferred_element_type=jnp.float32)
        aif = jnp.maximum(ai, 0.0) if add_relu else ai
        Sv = ai.shape[0]

        # ai_rs = ai.reshape(r, Sv) is a raw row-major data reshape (matches torch).
        # With Sv = c*r, column-block j of ai_rs is a stride-c row selection of ai:
        #   ai_rs[:, j*r:(j+1)*r][p, k] == ai[p*c + j, k]
        # Realize the selection with a one-hot matmul (iota/compare/MXU only), and use
        # associativity:  (at @ ai_rs) @ rhs  ==  at @ (ai_rs @ rhs)  so only (r, r)
        # matrices ever materialize (no (S, Sv) intermediate in VMEM).
        row_p = jax.lax.broadcasted_iota(jnp.int32, (r, Sv), 0)
        row_i = jax.lax.broadcasted_iota(jnp.int32, (r, Sv), 1)

        if multiply_ones:
            m = jnp.zeros((r, 1), jnp.float32)
        else:
            M = jnp.zeros((r, r), jnp.float32)
        for j in range(c):                                   # c static & small -> unrolled
            sel = (row_i == row_p * c + j).astype(jnp.float32)            # (r, Sv) one-hot
            g_j = jnp.dot(sel, aif, preferred_element_type=jnp.float32)   # = f(ai_rs)[:, j*r:(j+1)*r]
            if multiply_ones:
                # (f(ai_rs) @ ones) is a row-sum broadcast -> cheap reduce, no matmul
                m = m + jnp.sum(g_j, axis=1, keepdims=True)
            else:
                M = M + jnp.dot(g_j, ai[j * r:(j + 1) * r, :],
                                preferred_element_type=jnp.float32)       # (r, r)
        if multiply_ones:
            M = jnp.broadcast_to(m, (r, r))

        # W_eff = M @ (lora_B.T * scaling)   -> (r, OUT), cached for all S tiles of this batch
        weff = jnp.dot(M.astype(jnp.bfloat16), wb_ref[...],
                       preferred_element_type=jnp.float32)
        weff_ref[...] = weff.astype(jnp.bfloat16)

    # ---- text branch for this sequence tile + final lane-dense projection ----
    at = jnp.dot(x_ref[0], wt_ref[...], preferred_element_type=jnp.float32)   # (tS, r)
    if add_relu:
        at = jnp.maximum(at, 0.0)
    o_ref[0] = jnp.dot(at.astype(jnp.bfloat16), weff_ref[...],
                       preferred_element_type=jnp.float32)                    # (tS, OUT)


def vl_linear_split_forward(x, vis_feat, w_text, w_img, wb_scaled, *,
                            add_relu=False, multiply_ones=False, s_tile=None):
    B, S, D = x.shape
    Bv, Sv, Dv = vis_feat.shape
    assert B == Bv and D == Dv
    r = w_text.shape[1]
    out_f = wb_scaled.shape[1]
    # TODO(synk): Sv not divisible by r would need a general in-kernel row-major
    # reshape/gather path; pad the vision sequence to a multiple of r upstream.
    assert Sv % r == 0, "fused kernel requires Sv % r == 0"
    c = Sv // r
    tS = S if s_tile is None else s_tile
    assert S % tS == 0 and tS % 8 == 0
    nS = S // tS

    kernel = functools.partial(_fused_kernel, c=c, add_relu=bool(add_relu),
                               multiply_ones=bool(multiply_ones))
    return pl.pallas_call(
        kernel,
        out_shape=jax.ShapeDtypeStruct((B, S, out_f), jnp.float32),
        grid_spec=pltpu.PrefetchScalarGridSpec(
            num_scalar_prefetch=0,
            grid=(B, nS),   # S-tile axis innermost: vis block + W_eff scratch reused across it
            in_specs=[
                pl.BlockSpec((1, tS, D), lambda b, s: (b, s, 0)),   # x tile
                pl.BlockSpec((1, Sv, D), lambda b, s: (b, 0, 0)),   # vis_feat[b] (not re-DMA'd over s)
                pl.BlockSpec((D, r), lambda b, s: (0, 0)),          # prefused text A weight
                pl.BlockSpec((D, r), lambda b, s: (0, 0)),          # prefused img  A weight
                pl.BlockSpec((r, out_f), lambda b, s: (0, 0)),      # scaled lora_B.T
            ],
            out_specs=pl.BlockSpec((1, tS, out_f), lambda b, s: (b, s, 0)),
            scratch_shapes=[pltpu.VMEM((r, out_f), jnp.bfloat16)],  # per-batch W_eff cache
        ),
        # For production shapes (large S/D), shrink tS so double-buffered x tiles fit VMEM
        # and raise vmem_limit_bytes via CompilerParams; at these sizes defaults are ample.
        compiler_params=pltpu.CompilerParams(
            dimension_semantics=("parallel", "arbitrary")),
    )(x, vis_feat, w_text, w_img, wb_scaled)


# ---------------------------------------------------------------------------
# Module wrapper
# ---------------------------------------------------------------------------
class VLLinearSplitPallas:
    def __init__(self, in_features, out_features, r, lora_alpha=1,
                 add_relu=False, key=None):
        assert r > 0 and r % 4 == 0
        self.r = r
        self.scaling = lora_alpha / r
        self.add_relu = add_relu
        r4 = r // 4
        keys = jax.random.split(key, 5)

        def kaiming_uniform(k, fan_in, shape):
            # nn.init.kaiming_uniform_(w, a=sqrt(5)) -> bound = 1/sqrt(fan_in)
            bound = 1.0 / math.sqrt(fan_in)
            return jax.random.uniform(k, shape, jnp.float32, -bound, bound)

        # f32 factors stored pre-transposed (in, out) == torch_weight.T (for the reference)
        self.wa_text = kaiming_uniform(keys[0], in_features, (in_features, r4))
        self.wa_img = kaiming_uniform(keys[1], in_features, (in_features, r4))
        self.wa_text_up = kaiming_uniform(keys[2], r4, (r4, r))
        self.wa_img_up = kaiming_uniform(keys[3], r4, (r4, r))
        # NOTE: torch zero-inits lora_B (-> all-zero output). We use a small deterministic
        # random init so the kernel computation is non-trivial to validate.
        self.wb_T = 0.02 * jax.random.normal(keys[4], (r, out_features), jnp.float32)

        # --- kernel operands: prefused A-path weights, scaling folded into B, bf16 ---
        self.w_text_fused = (self.wa_text @ self.wa_text_up).astype(jnp.bfloat16)   # (D, r)
        self.w_img_fused = (self.wa_img @ self.wa_img_up).astype(jnp.bfloat16)      # (D, r)
        self.wb_scaled = (self.wb_T * self.scaling).astype(jnp.bfloat16)             # (r, OUT)

    def __call__(self, x, vis_feat, multiply_ones=False, s_tile=None):
        # lora_dropout has p=0.0 in this config -> identity (eval semantics)
        return vl_linear_split_forward(
            x.astype(jnp.bfloat16), vis_feat.astype(jnp.bfloat16),
            self.w_text_fused, self.w_img_fused, self.wb_scaled,
            add_relu=self.add_relu, multiply_ones=multiply_ones, s_tile=s_tile)


# ---------------------------------------------------------------------------
# Pure-JAX reference (f32, unfused weights, exact torch op order) for validation
# ---------------------------------------------------------------------------
def ref_forward(x, vis, m, multiply_ones=False):
    at = x @ m.wa_text @ m.wa_text_up
    ai = vis @ m.wa_img @ m.wa_img_up
    B, Sv, r = ai.shape
    ai_rs = ai.reshape(B, r, Sv)          # raw data reshape, exactly as in torch
    if m.add_relu:
        at = jnp.maximum(at, 0.0)
        ai_rs = jnp.maximum(ai_rs, 0.0)
    rhs = jnp.ones_like(ai) if multiply_ones else ai
    after_A = at @ ai_rs @ rhs
    return (after_A @ m.wb_T) * m.scaling


if __name__ == "__main__":
    B, S, Sv = 2, 16, 32          # text seq = 16, vision seq = 32 (Sv = 2 * r)
    D, OUT, R = 128, 256, 16      # in_features, out_features (lane-dense), lora rank

    key = jax.random.PRNGKey(0)
    k_x, k_v, k_p = jax.random.split(key, 3)
    x = jax.random.normal(k_x, (B, S, D), jnp.float32)
    vis_feat = jax.random.normal(k_v, (B, Sv, D), jnp.float32)

    def check(mod, multiply_ones):
        out = mod(x, vis_feat, multiply_ones=multiply_ones, s_tile=8)
        out = jax.block_until_ready(out)
        ref = ref_forward(x, vis_feat, mod, multiply_ones=multiply_ones)
        assert out.shape == (B, S, OUT)
        # bf16 MXU operands (f32 accumulation) -> compare with a relative-to-scale bound
        err = float(jnp.max(jnp.abs(out - ref)) / (jnp.max(jnp.abs(ref)) + 1e-8))
        assert err < 3e-2, f"mismatch vs reference: rel err {err}"

    mod_plain = VLLinearSplitPallas(D, OUT, R, lora_alpha=1, add_relu=False, key=k_p)
    mod_relu = VLLinearSplitPallas(D, OUT, R, lora_alpha=1, add_relu=True, key=k_p)

    check(mod_plain, multiply_ones=False)   # default path
    check(mod_relu, multiply_ones=True)     # relu + ones path

    print("KERNEL_OK")
</pallas_src>

<mosaic_0001>
module attributes {stable_mosaic.version = 11 : i64} {
  func.func @_fused_kernel(%arg0: i32, %arg1: i32, %arg2: memref<1x8x128xbf16, #tpu.memory_space<vmem>>, %arg3: memref<1x32x128xbf16, #tpu.memory_space<vmem>>, %arg4: memref<128x16xbf16, #tpu.memory_space<vmem>>, %arg5: memref<128x16xbf16, #tpu.memory_space<vmem>>, %arg6: memref<16x256xbf16, #tpu.memory_space<vmem>>, %arg7: memref<1x8x256xf32, #tpu.memory_space<vmem>>, %arg8: memref<16x256xbf16, #tpu.memory_space<vmem>>) attributes {dimension_semantics = [#tpu.dimension_semantics<parallel>, #tpu.dimension_semantics<arbitrary>], iteration_bounds = array<i64: 2, 2>, scalar_prefetch = 0 : i64, scratch_operands = 1 : i64, tpu.core_type = #tpu.core_type<tc>, window_params = [{transform_indices = @transform_0, window_bounds = array<i64: 1, 8, 128>}, {transform_indices = @transform_1, window_bounds = array<i64: 1, 32, 128>}, {pipeline_mode = #tpu.pipeline_mode<synchronous>, transform_indices = @transform_2, window_bounds = array<i64: 128, 16>}, {pipeline_mode = #tpu.pipeline_mode<synchronous>, transform_indices = @transform_3, window_bounds = array<i64: 128, 16>}, {pipeline_mode = #tpu.pipeline_mode<synchronous>, transform_indices = @transform_4, window_bounds = array<i64: 16, 256>}, {transform_indices = @transform_5, window_bounds = array<i64: 1, 8, 256>}]} {
    %c0_i32 = arith.constant 0 : i32
    %0 = arith.cmpi eq, %arg1, %c0_i32 : i32
    %1 = arith.extui %0 : i1 to i32
    %c0_i32_0 = arith.constant 0 : i32
    %2 = arith.cmpi ne, %1, %c0_i32_0 : i32
    scf.if %2 {
      %c0_11 = arith.constant 0 : index
      %c0_12 = arith.constant 0 : index
      %c0_13 = arith.constant 0 : index
      %13 = vector.load %arg3[%c0_11, %c0_12, %c0_13] : memref<1x32x128xbf16, #tpu.memory_space<vmem>>, vector<1x32x128xbf16>
      %14 = vector.shape_cast %13 : vector<1x32x128xbf16> to vector<32x128xbf16>
      %c0_14 = arith.constant 0 : index
      %c0_15 = arith.constant 0 : index
      %15 = vector.load %arg5[%c0_14, %c0_15] : memref<128x16xbf16, #tpu.memory_space<vmem>>, vector<128x16xbf16>
      %cst_16 = arith.constant dense<0.000000e+00> : vector<32x16xf32>
      %16 = tpu.matmul %14, %15, %cst_16 {dimension_numbers = #tpu.dot_dimension_numbers<[1], [0], [0], [1], [0, 0, 1, 1], [], []>} : vector<32x128xbf16>, vector<128x16xbf16>, vector<32x16xf32> -> vector<32x16xf32>
      %17 = tpu.iota {dimensions = array<i32: 0>} : vector<16x32xi32>
      %18 = tpu.iota {dimensions = array<i32: 1>} : vector<16x32xi32>
      %cst_17 = arith.constant 0.000000e+00 : f32
      %19 = vector.broadcast %cst_17 : f32 to vector<16x16xf32>
      %c2_i32 = arith.constant 2 : i32
      %20 = vector.broadcast %c2_i32 : i32 to vector<16x32xi32>
      %21 = arith.muli %17, %20 : vector<16x32xi32>
      %c0_i32_18 = arith.constant 0 : i32
      %22 = vector.broadcast %c0_i32_18 : i32 to vector<16x32xi32>
      %23 = arith.addi %21, %22 : vector<16x32xi32>
      %24 = arith.cmpi eq, %18, %23 : vector<16x32xi32>
      %25 = arith.extui %24 : vector<16x32xi1> to vector<16x32xi32>
      %26 = arith.sitofp %25 : vector<16x32xi32> to vector<16x32xf32>
      %cst_19 = arith.constant dense<0.000000e+00> : vector<16x16xf32>
      %27 = tpu.matmul %26, %16, %cst_19 {dimension_numbers = #tpu.dot_dimension_numbers<[1], [0], [0], [1], [0, 0, 1, 1], [], []>} : vector<16x32xf32>, vector<32x16xf32>, vector<16x16xf32> -> vector<16x16xf32>
      %28 = vector.extract_strided_slice %16 {offsets = [0, 0], sizes = [16, 16], strides = [1, 1]} : vector<32x16xf32> to vector<16x16xf32>
      %cst_20 = arith.constant dense<0.000000e+00> : vector<16x16xf32>
      %29 = tpu.matmul %27, %28, %cst_20 {dimension_numbers = #tpu.dot_dimension_numbers<[1], [0], [0], [1], [0, 0, 1, 1], [], []>} : vector<16x16xf32>, vector<16x16xf32>, vector<16x16xf32> -> vector<16x16xf32>
      %30 = arith.addf %19, %29 : vector<16x16xf32>
      %c2_i32_21 = arith.constant 2 : i32
      %31 = vector.broadcast %c2_i32_21 : i32 to vector<16x32xi32>
      %32 = arith.muli %17, %31 : vector<16x32xi32>
      %c1_i32 = arith.constant 1 : i32
      %33 = vector.broadcast %c1_i32 : i32 to vector<16x32xi32>
      %34 = arith.addi %32, %33 : vector<16x32xi32>
      %35 = arith.cmpi eq, %18, %34 : vector<16x32xi32>
      %36 = arith.extui %35 : vector<16x32xi1> to vector<16x32xi32>
      %37 = arith.sitofp %36 : vector<16x32xi32> to vector<16x32xf32>
      %cst_22 = arith.constant dense<0.000000e+00> : vector<16x16xf32>
      %38 = tpu.matmul %37, %16, %cst_22 {dimension_numbers = #tpu.dot_dimension_numbers<[1], [0], [0], [1], [0, 0, 1, 1], [], []>} : vector<16x32xf32>, vector<32x16xf32>, vector<16x16xf32> -> vector<16x16xf32>
      %39 = vector.extract_strided_slice %16 {offsets = [16, 0], sizes = [16, 16], strides = [1, 1]} : vector<32x16xf32> to vector<16x16xf32>
      %cst_23 = arith.constant dense<0.000000e+00> : vector<16x16xf32>
      %40 = tpu.matmul %38, %39, %cst_23 {dimension_numbers = #tpu.dot_dimension_numbers<[1], [0], [0], [1], [0, 0, 1, 1], [], []>} : vector<16x16xf32>, vector<16x16xf32>, vector<16x16xf32> -> vector<16x16xf32>
      %41 = arith.addf %30, %40 : vector<16x16xf32>
      %42 = arith.truncf %41 : vector<16x16xf32> to vector<16x16xbf16>
      %c0_24 = arith.constant 0 : index
      %c0_25 = arith.constant 0 : index
      %43 = vector.load %arg6[%c0_24, %c0_25] : memref<16x256xbf16, #tpu.memory_space<vmem>>, vector<16x256xbf16>
      %cst_26 = arith.constant dense<0.000000e+00> : vector<16x256xf32>
      %44 = tpu.matmul %42, %43, %cst_26 {dimension_numbers = #tpu.dot_dimension_numbers<[1], [0], [0], [1], [0, 0, 1, 1], [], []>} : vector<16x16xbf16>, vector<16x256xbf16>, vector<16x256xf32> -> vector<16x256xf32>
      %45 = arith.truncf %44 : vector<16x256xf32> to vector<16x256xbf16>
      %c0_27 = arith.constant 0 : index
      %c0_28 = arith.constant 0 : index
      %46 = vector.load %arg8[%c0_27, %c0_28] : memref<16x256xbf16, #tpu.memory_space<vmem>>, vector<16x256xbf16>
      tpu.vector_store %arg8[%c0_27, %c0_28], %45 {strides = array<i32>} : memref<16x256xbf16, #tpu.memory_space<vmem>>, vector<16x256xbf16>,
    } else {
    }
    %c0 = arith.constant 0 : index
    %c0_1 = arith.constant 0 : index
    %c0_2 = arith.constant 0 : index
    %3 = vector.load %arg2[%c0, %c0_1, %c0_2] : memref<1x8x128xbf16, #tpu.memory_space<vmem>>, vector<1x8x128xbf16>
    %4 = vector.shape_cast %3 : vector<1x8x128xbf16> to vector<8x128xbf16>
    %c0_3 = arith.constant 0 : index
    %c0_4 = arith.constant 0 : index
    %5 = vector.load %arg4[%c0_3, %c0_4] : memref<128x16xbf16, #tpu.memory_space<vmem>>, vector<128x16xbf16>
    %cst = arith.constant dense<0.000000e+00> : vector<8x16xf32>
    %6 = tpu.matmul %4, %5, %cst {dimension_numbers = #tpu.dot_dimension_numbers<[1], [0], [0], [1], [0, 0, 1, 1], [], []>} : vector<8x128xbf16>, vector<128x16xbf16>, vector<8x16xf32> -> vector<8x16xf32>
    %7 = arith.truncf %6 : vector<8x16xf32> to vector<8x16xbf16>
    %c0_5 = arith.constant 0 : index
    %c0_6 = arith.constant 0 : index
    %8 = vector.load %arg8[%c0_5, %c0_6] : memref<16x256xbf16, #tpu.memory_space<vmem>>, vector<16x256xbf16>
    %cst_7 = arith.constant dense<0.000000e+00> : vector<8x256xf32>
    %9 = tpu.matmul %7, %8, %cst_7 {dimension_numbers = #tpu.dot_dimension_numbers<[1], [0], [0], [1], [0, 0, 1, 1], [], []>} : vector<8x16xbf16>, vector<16x256xbf16>, vector<8x256xf32> -> vector<8x256xf32>
    %c0_8 = arith.constant 0 : index
    %c0_9 = arith.constant 0 : index
    %c0_10 = arith.constant 0 : index
    %10 = vector.load %arg7[%c0_8, %c0_9, %c0_10] : memref<1x8x256xf32, #tpu.memory_space<vmem>>, vector<1x8x256xf32>
    %11 = vector.shape_cast %10 : vector<1x8x256xf32> to vector<8x256xf32>
    %12 = vector.shape_cast %9 : vector<8x256xf32> to vector<1x8x256xf32>
    tpu.vector_store %arg7[%c0_8, %c0_9, %c0_10], %12 {strides = array<i32>} : memref<1x8x256xf32, #tpu.memory_space<vmem>>, vector<1x8x256xf32>,
    return
  }
  func.func @transform_0(%arg0: i32, %arg1: i32) -> (i32, i32, i32) {
    %c0_i32 = arith.constant 0 : i32
    %c0_i32_0 = arith.constant 0 : i32
    return %arg0, %arg1, %c0_i32 : i32, i32, i32
  }
  func.func @transform_1(%arg0: i32, %arg1: i32) -> (i32, i32, i32) {
    %c0_i32 = arith.constant 0 : i32
    %c0_i32_0 = arith.constant 0 : i32
    %c0_i32_1 = arith.constant 0 : i32
    return %arg0, %c0_i32, %c0_i32_0 : i32, i32, i32
  }
  func.func @transform_2(%arg0: i32, %arg1: i32) -> (i32, i32) {
    %c0_i32 = arith.constant 0 : i32
    %c0_i32_0 = arith.constant 0 : i32
    %c0_i32_1 = arith.constant 0 : i32
    return %c0_i32, %c0_i32_0 : i32, i32
  }
  func.func @transform_3(%arg0: i32, %arg1: i32) -> (i32, i32) {
    %c0_i32 = arith.constant 0 : i32
    %c0_i32_0 = arith.constant 0 : i32
    %c0_i32_1 = arith.constant 0 : i32
    return %c0_i32, %c0_i32_0 : i32, i32
  }
  func.func @transform_4(%arg0: i32, %arg1: i32) -> (i32, i32) {
    %c0_i32 = arith.constant 0 : i32
    %c0_i32_0 = arith.constant 0 : i32
    %c0_i32_1 = arith.constant 0 : i32
    return %c0_i32, %c0_i32_0 : i32, i32
  }
  func.func @transform_5(%arg0: i32, %arg1: i32) -> (i32, i32, i32) {
    %c0_i32 = arith.constant 0 : i32
    %c0_i32_0 = arith.constant 0 : i32
    return %arg0, %arg1, %c0_i32 : i32, i32, i32
  }
}

</mosaic_0001>

<bundles_post_ra>
// kernel: tpu_custom_call.1
= control target key start
LH: loop header
LB: loop body
LE: loop exit
PB: predicated region body
PF: predicated region fallthrough
CT: control target
= control target key end

     0   :  { %10 = vsyncpa [#allocation4], 0  ;;  %s1339_s0 = inlined_call_operand.vmem [shape: bf16[2,16,128], index: 0, kind: input, shape index: {}]   ;;  %s1340_s1 = inlined_call_operand.vmem [shape: bf16[2,32,128], index: 1, kind: input, shape index: {}]   ;;  %s1341_s2 = inlined_call_operand.vmem [shape: bf16[128,16], index: 2, kind: input, shape index: {}]   ;;  %s1342_s3 = inlined_call_operand.vmem [shape: bf16[128,16], index: 3, kind: input, shape index: {}]   ;;  %s1343_s4 = inlined_call_operand.vmem [shape: bf16[16,256], index: 4, kind: input, shape index: {}]   ;;  %s1344_s5 = inlined_call_operand.hbm [shape: f32[2,16,256], index: 5, kind: output, shape index: {}]  }
   0x1   :  { %12 = vsyncpa [#allocation4 + $0x1], 0  ;;  %s1135_s18 = smov 0   ;;  %s1137_s19 = smov 0  }
   0x2   :  { %s1139_s20 = smov 0   ;;  %s1141_s21 = smov 0  }
   0x3   :  { %s1143_s22 = smov 0   ;;  %s1145_s23 = smov 0  }
   0x4   :  { %s1147_s24 = smov 0   ;;  %s1149_s25 = smov 0  }
   0x5 LB: > { %1350 = sst [smem:[#allocation6_spill]] %s1094_s23  ;;  %s792_s26 = sadd.s32 4294967295, %s1102_s25   ;;  %s1102_s25 = sphi %s1149_s25, %s18_s25   ;;  %s1098_s24 = sphi %s1147_s24, %s1360_s24   ;;  %s1094_s23 = sphi %s1145_s23, %s1359_s23   ;;  %s1090_s22 = sphi %s1143_s22, %s1358_s22   ;;  %s1086_s21 = sphi %s1141_s21, %s1357_s21   ;;  %s1082_s20 = sphi %s1139_s20, %s1363_s20   ;;  %s1078_s19 = sphi %s1137_s19, %s1362_s19   ;;  %s1074_s18 = sphi %s1135_s18, %s1361_s18  }
   0x6   : > { %1351 = sst [smem:[#allocation7_spill]] %s1098_s24  ;;  %s793_s27 = sadd.s32 4294967294, %s1102_s25  }
   0x7   : > { %s27_s28 = sadd.s32 1, %s1094_s23  ;;  %s30_s29 = sadd.s32 1, %s1098_s24 }
   0x8   : > { %p28_p0 = scmp.ge.s32.totalorder %s27_s28, 2  ;;  %p166_p1 = scmp.ne.s32.totalorder %s1082_s20, %s1078_s19 }
   0x9   : > { %p167_p2 = scmp.eq.s32.totalorder %s792_s26, 3  ;;  %p172_p5 = scmp.ne.s32.totalorder %s1078_s19, %s1074_s18 }
   0xa   : > { %s1365_s28 = smov (%p28_p0, %s27_s28), 0  ;;  %s1367_s29 = smov (!%p28_p0, %s30_s29), %s1098_s24 }
   0xb   : > { %1352 = sst [smem:[#allocation8_spill]] %s1365_s28  ;;  %s152_s30 = ssub.s32 %s1094_s23, %s1365_s28 }
   0xc   : > { %p1186_p3 = por %p167_p2, %p166_p1  ;;  %p32_p4 = scmp.ge.s32.totalorder %s1367_s29, 2 }
   0xd   : > { %p173_p6 = scmp.eq.s32.totalorder %s793_s27, 3  ;;  %p796_p7 = scmp.ge.s32.totalorder %s1102_s25, 1 }
   0xe   : > { %s1369_s29 = smov (%p32_p4, %s1367_s29), 0  ;;  %p219_p9 = scmp.lt.s32.totalorder %s1102_s25, 5 }
   0xf   : > { %1354 = sst [smem:[#allocation9_spill]] %s1369_s29  ;;  %p1195_p8 = por %p173_p6, %p172_p5 }
  0x10   : > { %s151_s8 = ssub.s32 %s1098_s24, %s1369_s29  ;;  %s156_s9 = sadd.s32 1, %s1082_s20 }
  0x11   : > { %s153_s10 = sor.u32 %s152_s30, %s151_s8  ;;  %p220_p10 = pnand %p796_p7, %p219_p9 }
  0x12   : > { %p154_p11 = scmp.eq.s32.totalorder %s153_s10, 0  ;;  %s1348_s12 = sand.u32 (!%p220_p10), 1, %s1078_s19  }
  0x13   : > { %223 = sbr.rel (%p220_p10) target bundleno = 958 (0x3be), region = 40  ;;  %p255_p12 = scmp.lt.s32.totalorder (!%p220_p10), %s1090_s22, 1 }
  0x14   : > { %s1204_s11 = scalar_select %p154_p11, %s1082_s20, %s156_s9  }
  0x15   : > { %s797_s13 = sshll.u32 (!%p220_p10), %s1348_s12, 4  ;;  %p257_p13 = scmp.lt.s32.totalorder (!%p220_p10), %s1086_s21, 1 }
  0x16   : > { %s1221_s24 = scalar_lea.vmem (!%p220_p10), [#allocation3], %s797_s13  ;;  %p802_p0 = scmp.ne.s32.totalorder (!%p220_p10), %s1086_s21, 0 }
  0x18   : > { %s256_s14 = scalar_select %p255_p12, %s1090_s22, 1 }
  0x19   : > { %s258_s15 = scalar_select %p257_p13, %s1086_s21, 1 }
  0x1a   : > { %s798_s16 = sshll.u32 %s256_s14, 1  ;;  %s913_s17 = sshll.u32 %s256_s14, 4 }
  0x1b   : > { %s260_s26 = sadd.s32 %s798_s16, %s258_s15  ;;  %s267_s8 = scalar_lea.vmem %s1340_s1, %s913_s17 }
  0x1c   : > { %s799_s9 = sshll.u32 %s260_s26, 2  ;;  %272 = sbr.rel (%p802_p0) target bundleno = 658 (0x292), region = 44 }
  0x1d   : > { %s1219_s28 = scalar_lea.vmem %s1339_s0, %s799_s9 }
  0x21   : > { %v923_v0 = vld [vmem:[%s1342_s3 + $0x38] sm:$0xff]  ;;  %v922_v1 = vld [vmem:[%s1342_s3 + $0x30] sm:$0xff]  ;;  %v921_v2 = vld [vmem:[%s1342_s3 + $0x28] sm:$0xff]  ;;  %v372_v12 = vlaneseq  ;;  %v1104_v21 = vmov 0.0   ;;  %vm385_vm2 = vcmask 261120   ;;  %vm452_vm5 = vcmask 130048  }
  0x22   : > { %353 = vmatpush.bf16.msra.mxu0 %v923_v0  ;;  %v920_v3 = vld [vmem:[%s1342_s3 + $0x20] sm:$0xff]  ;;  %v919_v4 = vld [vmem:[%s1342_s3 + $0x18] sm:$0xff]  ;;  %v918_v5 = vld [vmem:[%s1342_s3 + $0x10] sm:$0xff] }
  0x23   : > { %v917_v6 = vld [vmem:[%s1342_s3 + $0x8] sm:$0xff]  ;;  %v916_v7 = vld [vmem:[%s1342_s3] sm:$0xff]  ;;  %v373_v13 = vshrl.u32 %v372_v12, 7  ;;  %v376_v16 = vand.u32 127, %v372_v12 }
  0x24   : > { %v914_v8 = vld [vmem:[%s267_s8] sm:$0xff]  ;;  %v915_v9 = vld [vmem:[%s267_s8 + $0x8] sm:$0xff] }
  0x25   : > { %v377_v15 = vmul.u32 2, %v373_v13  ;;  %v374_v18 = vadd.s32 8, %v373_v13  ;;  %v924_v31 = vld [vmem:[%s1343_s4 + $0x4] sm:$0xf]  ;;  %v859_v32 = vld [vmem:[%s1343_s4 + $0x8] sm:$0xf0] }
  0x26   : > { %354 = vmatpush.bf16.msra.mxu0 %v922_v1  ;;  %v862_v33 = vor.u32 %v924_v31, %v859_v32  ;;  %v857_v34 = vld [vmem:[%s1343_s4] sm:$0xf]  ;;  %v925_v35 = vld [vmem:[%s1343_s4 + $0x4] sm:$0xf0] }
  0x27   : > { %v415_v17 = vadd.s32 1, %v377_v15  ;;  %vm379_vm0 = vcmp.eq.s32.totalorder %v376_v16, %v377_v15  ;;  %v378_v20 = vmul.u32 2, %v374_v18  ;;  %v858_v36 = vor.u32 %v925_v35, %v857_v34 }
  0x28   : > { %v843_v22 = vsel %vm379_vm0, 1.0, %v1104_v21 }
  0x29   : > { %vm417_vm1 = vcmp.eq.s32.totalorder %v376_v16, %v415_v17  ;;  %v416_v24 = vadd.s32 1, %v378_v20  ;;  %vm380_vm3 = vcmp.eq.s32.totalorder %v376_v16, %v378_v20 }
  0x2a   : > { %355 = vmatpush.bf16.msra.mxu0 %v921_v2  ;;  %v847_v23 = vsel %vm417_vm1, 1.0, %v1104_v21  ;;  %v844_v25 = vsel %vm380_vm3, 1.0, %v1104_v21 }
  0x2b   : > { %vm418_vm4 = vcmp.eq.s32.totalorder %v376_v16, %v416_v24 }
  0x2c   : > { %v848_v26 = vsel %vm418_vm4, 1.0, %v1104_v21 }
  0x2e   : > { %356 = vmatpush.bf16.msra.mxu0 %v920_v3 }
  0x32   : > { %357 = vmatpush.bf16.msra.mxu0 %v919_v4 }
  0x36   : > { %358 = vmatpush.bf16.msra.mxu0 %v918_v5 }
  0x3a   : > { %359 = vmatpush.bf16.msra.mxu0 %v917_v6 }
  0x3e   : > { %360 = vmatpush.bf16.msra.mxu0 %v916_v7 }
  0x41   : > { %361 = vmatmul.bf16.vlgmr.msra.gmra.mxu0 %v914_v8 }
  0x51   : > { %366 = vmatmul.bf16.gmra.mxu0 %v915_v9 }
  0xbe   : > { %v362_v10 = vpop.f32.mrf.mxu0 }
  0xc6   : > { %v364_v11 = vpop.f32.mrf.mxu0 }
  0xce   : > { %v367_v14 = vpop.f32.mrf.mxu0 }
  0xd6   : > { %v369_v19 = vpop.f32.mrf.mxu0 }
  0xd7   : > { %404 = vmatpush.msra.mxu1 %v369_v19  ;;  %441 = vmatpush.msra.mxu2 %v369_v19 }
  0xd8   : > { %473 = vmatpush.msra.mxu3 %v369_v19 }
  0xd9   : > { %405 = vmatpush.msra.mxu1 %v367_v14  ;;  %442 = vmatpush.msra.mxu2 %v367_v14 }
  0xda   : > { %474 = vmatpush.msra.mxu3 %v367_v14 }
  0xdb   : > { %406 = vmatpush.msra.mxu1 %v364_v11  ;;  %443 = vmatpush.msra.mxu2 %v364_v11 }
  0xdc   : > { %502 = vmatpush.msrb.mxu3 %v364_v11 }
  0xdd   : > { %407 = vmatpush.msra.mxu1 %v362_v10  ;;  %444 = vmatpush.msra.mxu2 %v362_v10 }
  0xde   : > { %503 = vmatpush.msrb.mxu3 %v362_v10  ;;  %845 = vmatmul.msk.f32.vlgmr.msra.gmra.mxu1 %vm385_vm2, %v843_v22 }
  0xdf   : > { %849 = vmatmul.msk.f32.vlgmr.msra.gmra.mxu2 %vm385_vm2, %v847_v23  ;;  %534 = vmatpush.bf16.msrb.mxu1 %v858_v36 }
  0xe0   : > { %548 = vmatpush.bf16.msrb.mxu2 %v862_v33 }
  0xe6   : > { %846 = vmatmul.msk.f32.gmra.mxu1 %vm385_vm2, %v844_v25 }
  0xe7   : > { %850 = vmatmul.msk.f32.gmra.mxu2 %vm385_vm2, %v848_v26 }
 0x15b   : > { %v409_v29 = vpop.f32.mrf.mxu1 }
 0x162   : > { %v446_v27 = vpop.f32.mrf.mxu2 }
 0x163   : > { %851 = vmatmul.msk.f32.vlgmr.msra.gmra.mxu3 %vm452_vm5, %v446_v27  ;;  %v412_v30 = vpop.f32.mrf.mxu1 }
 0x16a   : > { %v449_v28 = vpop.f32.mrf.mxu2 }
 0x16b   : > { %852 = vmatmul.msk.f32.gmra.mxu3 %vm452_vm5, %v449_v28 }
 0x173   : > { %853 = vmatmul.msk.f32.vlgmr.msrb.gmra.mxu3 %vm452_vm5, %v409_v29 }
 0x17b   : > { %854 = vmatmul.msk.f32.gmra.mxu3 %vm452_vm5, %v412_v30 }
 0x1e6   : > { %v476_v37 = vpop.f32.mrf.mxu3 }
 0x1ee   : > { %v479_v38 = vpop.f32.mrf.mxu3 }
 0x1f6   : > { %v505_v39 = vpop.f32.mrf.mxu3 }
 0x1f7   : > { %v506_v41 = vadd.f32 %v505_v39, %v476_v37 }
 0x1fe   : > { %v508_v40 = vpop.f32.mrf.mxu3 }
 0x1ff   : > { %v509_v42 = vadd.f32 %v508_v40, %v479_v38 }
 0x201   : > { %v511_v43 = vpack.c.bf16 %v509_v42, %v506_v41 }
 0x203   : > { %863 = vmatmul.msk.bf16.vlgmr.msrb.gmra.mxu1 %vm452_vm5, %v511_v43  ;;  %864 = vmatmul.msk.bf16.vlgmr.msrb.gmra.mxu2 %vm452_vm5, %v511_v43 }
 0x280   : > { %v536_v44 = vpop.f32.mrf.mxu1 }
 0x286   : > { %v550_v45 = vpop.f32.mrf.mxu2 }
 0x287   : > { %v555_v46 = vpack.c.bf16 %v550_v45, %v536_v44 }
 0x288   : > { %v538_v47 = vpop.f32.mrf.mxu1 }
 0x289   : > { %557 = vst [vmem:[#allocation2] sm:$0xff] %v555_v46 }
 0x28e   : > { %v552_v48 = vpop.f32.mrf.mxu2 }
 0x28f   : > { %v556_v49 = vpack.c.bf16 %v552_v48, %v538_v47 }
 0x291   : > { %558 = vst [vmem:[#allocation2 + $0x8] sm:$0xff] %v556_v49 }
 0x292 PF: > { %v933_v50 = vld [vmem:[%s1341_s2 + $0x38] sm:$0xff]  ;;  %v932_v51 = vld [vmem:[%s1341_s2 + $0x30] sm:$0xff]  ;;  %v931_v52 = vld [vmem:[%s1341_s2 + $0x28] sm:$0xff]  ;;  %vm650_vm6 = vcmask 130048   ;;  %s909_s30 = sshll.u32 %s1090_s22, 2  ;;  %s698_s16 = sshll.u32 %s1221_s24, 4  ;;  %s699_s16 = int_to_ptr.vmem [resolvable:$true] %s698_s16 }
 0x293   : > { %624 = vmatpush.bf16.msra.mxu0 %v933_v50  ;;  %v930_v53 = vld [vmem:[%s1341_s2 + $0x20] sm:$0xff]  ;;  %v929_v54 = vld [vmem:[%s1341_s2 + $0x18] sm:$0xff]  ;;  %v928_v55 = vld [vmem:[%s1341_s2 + $0x10] sm:$0xff]  ;;  %s1356_s29 = sand.u32 1, %s1078_s19   ;;  %s1028_s23 = scalar_lea.hbm %s1344_s5, 64 }
 0x294   : > { %v927_v56 = vld [vmem:[%s1341_s2 + $0x8] sm:$0xff]  ;;  %v926_v57 = vld [vmem:[%s1341_s2] sm:$0xff]  ;;  %s683_s13 = scalar_lea.sflag [#allocation4], %s1356_s29 }
 0x295   : > { %v559_v58 = vld [vmem:[%s1219_s28] sm:$0xf]  ;;  %v934_v61 = vld [vmem:[#allocation2 + $0x4] sm:$0xf]  ;;  %s908_s28 = sshll.u32 %s1086_s21, 1 }
 0x296   : > { %v899_v59 = vld [vmem:[#allocation2] sm:$0xf]  ;;  %s694_s9 = sadd.s32 %s909_s30, %s908_s28 }
 0x297   : > { %625 = vmatpush.bf16.msra.mxu0 %v932_v51  ;;  %s910_s10 = sshll.u32 %s694_s9, 3 }
 0x298   : > { %v935_v60 = vld [vmem:[#allocation2 + $0x4] sm:$0xf0]  ;;  %v901_v63 = vld [vmem:[#allocation2 + $0x8] sm:$0xf0]  ;;  %s696_s15 = scalar_lea.hbm %s1344_s5, %s910_s10 }
 0x299   : > { %v900_v62 = vor.u32 %v935_v60, %v899_v59  ;;  %v904_v0 = vor.u32 %v934_v61, %v901_v63  ;;  %s700_s17 = sshll.u32 %s696_s15, 4  ;;  %s701_s17 = int_to_ptr.hbm [resolvable:$true] %s700_s17 }
 0x29a   : > { %s1022_s21 = sshra.s32 %s701_s17, 4  ;;  %s1023_s21 = int_to_ptr.hbm [resolvable:$true] %s1022_s21 }
 0x29b   : > { %626 = vmatpush.bf16.msra.mxu0 %v931_v52  ;;  %661 = vmatpush.bf16.msra.mxu1 %v900_v62  ;;  %s1024_s22 = scalar_lea.hbm %s1023_s21, 16  ;;  %p1029_p5 = scmp.lt.s32.totalorder %s1023_s21, %s1344_s5 }
 0x29c   : > { %674 = vmatpush.bf16.msra.mxu2 %v904_v0  ;;  %p1025_p1 = scmp.ne.s32.totalorder %s1023_s21, %s1024_s22  ;;  %p1030_p6 = scmp.lt.s32.totalorder %s1028_s23, %s1024_s22 }
 0x29e   : > { %p1026_p2 = pnand %p1025_p1, %p1186_p3  ;;  %p1031_p7 = por %p1030_p6, %p1029_p5 }
 0x29f   : > { %627 = vmatpush.bf16.msra.mxu0 %v930_v53 }
 0x2a0   : > { %p1027_p4 = pneg %p1026_p2 }
 0x2a2   : > { %p1032_p9 = pnand %p1031_p7, %p1027_p4 }
 0x2a3   : > { %628 = vmatpush.bf16.msra.mxu0 %v929_v54 }
 0x2a7   : > { %629 = vmatpush.bf16.msra.mxu0 %v928_v55 }
 0x2ab   : > { %630 = vmatpush.bf16.msra.mxu0 %v927_v56 }
 0x2af   : > { %631 = vmatpush.bf16.msra.mxu0 %v926_v57 }
 0x2b2   : > { %632 = vmatmul.bf16.vlgmr.msra.gmra.mxu0 %v559_v58 }
 0x32f   : > { %v633_v1 = vpop.f32.mrf.mxu0 }
 0x330   : > { %v637_v2 = vpack.c.bf16 %v633_v1, %v633_v1 }
 0x332   : > { %905 = vmatmul.msk.bf16.vlgmr.msra.gmra.mxu1 %vm650_vm6, %v637_v2  ;;  %906 = vmatmul.msk.bf16.vlgmr.msra.gmra.mxu2 %vm650_vm6, %v637_v2 }
 0x337   : > { %v635_v3 = vpop.f32.mrf.mxu0 }
 0x3af   : > { %v663_v4 = vpop.f32.mrf.mxu1 }
 0x3b0   : > { %680 = vst [vmem:[%s1221_s24] sm:$0xff] %v663_v4 }
 0x3b5   : > { %v676_v5 = vpop.f32.mrf.mxu2 }
 0x3b6   : > { %681 = vst [vmem:[%s1221_s24 + $0x8] sm:$0xff] %v676_v5 }
 0x3b7   : > { %v665_v6 = vpop.f32.mrf.mxu1 }
 0x3b8   : > { %1035 = shalt.err (!%p1032_p9)
}
 0x3b9   : > { %936 = dma.vmem_to_hbm [thread:$0]  (%p1186_p3), %s699_s16, 256, %s701_s17, %s683_s13  }
 0x3bd   : > { %v678_v7 = vpop.f32.mrf.mxu2 }
 0x3be PF: > { %p942_p10 = scmp.ge.s32.totalorder %s1102_s25, 2  ;;  %s712_s24 = sand.u32 1, %s1074_s18  }
 0x3bf   : > { %s713_s30 = scalar_lea.sflag [#allocation4], %s712_s24 }
 0x3c0   : > { %p939_p11 = pnand %p942_p10, %p1195_p8 }
 0x3c2   : > { %p940_p12 = pneg %p939_p11 }
 0x3c4   : > { %1069 = dma.done.wait (%p940_p12), %s713_s30, 256  }
 0x3c5   : > { %1071 = vsyncadd (%p940_p12), %s713_s30, 4294967040  ;;  %s18_s25 = sadd.s32 1, %s1102_s25   ;;  %s1357_s21 = sld [smem:[#allocation6_spill]] }
 0x3c6   : > { %p15_p13 = scmp.ge.s32.totalorder %s18_s25, 6   ;;  %s1358_s22 = sld [smem:[#allocation7_spill]] }
 0x3c7   : > { %s1359_s23 = sld [smem:[#allocation8_spill]]  ;;  %s1361_s18 = smov %s1078_s19 }
 0x3c8   : > { %s1360_s24 = sld [smem:[#allocation9_spill]]  ;;  %s1362_s19 = smov %s1082_s20 }
 0x3c9   : > { %s1363_s20 = smov %s1204_s11  ;;  %17 = sbr.rel (!%p15_p13) target bundleno = 5 (0x5), region = 82 }
 0x3ce   :  { %719 = vsyncpa [#allocation4], 1 }
 0x3cf   :  { %721 = vsyncpa [#allocation4 + $0x1], 1 }

</bundles_post_ra>
